<compile_context>
chip_gen: v7x
topology: tpu7x:2x2x1
jax: 0.10.0
libtpu: 0.0.40
codegen_flags: <defaults>
</compile_context>

<pallas_src>
import jax
import jax.numpy as jnp
from jax import lax
from jax.experimental import pallas as pl
from jax.experimental.pallas import tpu as pltpu

LANES = 128
CHUNK_ROWS = 256                      # inner-loop slice: 256x128 f32 = 32 vregs/temp
MAX_BLOCK_BYTES = 8 * 1024 * 1024     # per-step HBM traffic target (both inputs)
MAX_BLOCK_ROWS = 16384                # hard cap (keeps v7x 64 MiB VMEM budget safe)


def _round_up(a, b):
    return -(-a // b) * b


def _sublane_granule(dtype):
    # Second-minor block granularity: 8 for 4-byte, 16 for 2-byte, 32 for 1-byte.
    return max(8, 32 // jnp.dtype(dtype).itemsize)


def _num_tensorcores():
    """1 on single-TC chips (v5e/v6e); 2 on multi-TC parts (v7x, v4 megacore)."""
    try:
        kind = jax.devices()[0].device_kind.lower()
    except Exception:
        return 1
    if any(m in kind for m in ("v7", "tpu7", "7x", "v4", "v5p")):
        return 2
    try:
        info = pltpu.get_tpu_info()
        for name in ("tensorcores_per_chip", "num_tensorcores", "num_cores", "core_count"):
            v = getattr(info, name, None)
            if isinstance(v, int) and v > 1:
                return min(v, 4)
    except Exception:
        pass
    return 1


def _make_dice_kernel(n_valid, block_rows, chunk_rows, blocks_per_core, total_blocks):
    n_full_rows = n_valid // LANES     # fully valid 128-lane rows
    rem = n_valid % LANES              # valid lanes in the trailing partial row
    n_chunks = block_rows // chunk_rows

    # Only the last logical block can be partially valid; its geometry is static.
    tail_blk = total_blocks - 1
    tail_base = tail_blk * block_rows
    tail_full_rows = max(0, min(block_rows, n_full_rows - tail_base))
    tail_valid_rows = max(0, min(block_rows, n_full_rows + (1 if rem else 0) - tail_base))
    tail_full_chunks = tail_full_rows // chunk_rows
    tail_has_masked_chunk = tail_valid_rows > tail_full_chunks * chunk_rows

    def kernel(x_ref, t_ref, o_ref):
        c = pl.program_id(0)               # per-core partial-sum index ("parallel")
        i = pl.program_id(1)               # reduction step ("arbitrary")
        blk = c * blocks_per_core + i      # logical block id (may run past the data)

        @pl.when(i == 0)
        def _init():
            o_ref[...] = jnp.zeros_like(o_ref)

        def fold(v):
            # (chunk_rows, 128) -> (8, 128): layout-preserving reshape + VPU adds.
            return jnp.sum(v.reshape(chunk_rows // 8, 8, LANES), axis=0)

        def chunk_partials(xs, ts, mask=None):
            # sigmoid(x) = 0.5 * (tanh(x/2) + 1): one EUP op per element; the
            # reference clamp(0,1) is a no-op on a sigmoid output.
            p = 0.5 * jnp.tanh(0.5 * xs.astype(jnp.float32)) + 0.5
            tf = ts.astype(jnp.float32)
            if mask is not None:
                p = jnp.where(mask, p, 0.0)
                tf = jnp.where(mask, tf, 0.0)
            return fold(p * tf), fold(p), fold(tf)

        def add3(a, b):
            return (a[0] + b[0], a[1] + b[1], a[2] + b[2])

        zeros3 = (jnp.zeros((8, LANES), jnp.float32),) * 3

        def unmasked_loop(num_chunks, acc0):
            def body(ci, acc):
                r0 = pl.multiple_of(ci * chunk_rows, chunk_rows)
                xs = x_ref[pl.ds(r0, chunk_rows), :]
                ts = t_ref[pl.ds(r0, chunk_rows), :]
                return add3(acc, chunk_partials(xs, ts))
            return lax.fori_loop(0, num_chunks, body, acc0)

        def write(acc):
            o_ref[0, 0, :, :] += acc[0]   # intersection partials
            o_ref[0, 1, :, :] += acc[1]   # sum(sigmoid(x)) partials
            o_ref[0, 2, :, :] += acc[2]   # sum(targets) partials

        in_range = blk < total_blocks
        is_full = (blk + 1) * block_rows <= n_full_rows

        @pl.when(in_range & is_full)
        def _fast():
            write(unmasked_loop(n_chunks, zeros3))

        @pl.when(in_range & jnp.logical_not(is_full))
        def _tail():
            # Reached only for blk == total_blocks - 1 (the last logical block).
            acc = unmasked_loop(tail_full_chunks, zeros3)
            if tail_has_masked_chunk:
                r0 = tail_full_chunks * chunk_rows            # static
                xs = x_ref[pl.ds(r0, chunk_rows), :]
                ts = t_ref[pl.ds(r0, chunk_rows), :]
                row = lax.broadcasted_iota(jnp.int32, (chunk_rows, LANES), 0)
                grow = tail_base + r0 + row                   # global row index
                mask = grow < n_full_rows
                if rem:
                    lane = lax.broadcasted_iota(jnp.int32, (chunk_rows, LANES), 1)
                    mask = mask | ((grow == n_full_rows) & (lane < rem))
                acc = add3(acc, chunk_partials(xs, ts, mask))
            # Chunks past tail_valid_rows contribute nothing -> skipped entirely.
            write(acc)

    return kernel


def dice_loss(inputs, targets, smooth=1.0):
    """Pallas implementation of DiceLoss.forward (returns a scalar f32)."""
    x = inputs.reshape(-1)
    t = targets.reshape(-1)
    n = x.shape[0]

    rows = -(-n // LANES)
    pad = rows * LANES - n
    if pad:
        # Rare path (n not a multiple of 128): minimal pad so the reshape below
        # is legal. The padded tail is masked out inside the kernel.
        x = jnp.pad(x, (0, pad))
        t = jnp.pad(t, (0, pad))
    x2 = x.reshape(rows, LANES)
    t2 = t.reshape(rows, LANES)

    granule = max(_sublane_granule(x2.dtype), _sublane_granule(t2.dtype))
    bytes_per_row = LANES * (x2.dtype.itemsize + t2.dtype.itemsize)
    max_rows = min(MAX_BLOCK_ROWS,
                   max(CHUNK_ROWS, (MAX_BLOCK_BYTES // bytes_per_row) // CHUNK_ROWS * CHUNK_ROWS))
    if rows >= CHUNK_ROWS:
        chunk_rows = CHUNK_ROWS
        block_rows = min(max_rows, _round_up(rows, CHUNK_ROWS))
    else:
        chunk_rows = _round_up(rows, granule)
        block_rows = chunk_rows

    total_blocks = -(-rows // block_rows)
    num_cores = max(1, min(_num_tensorcores(), total_blocks))
    blocks_per_core = -(-total_blocks // num_cores)
    grid = (num_cores, blocks_per_core)

    def in_map(c, i):
        # Clamp so the DMA never starts past the end of the array; logical
        # blocks past `total_blocks` skip all compute inside the kernel.
        return (jnp.minimum(c * blocks_per_core + i, total_blocks - 1), 0)

    kernel = _make_dice_kernel(n, block_rows, chunk_rows, blocks_per_core, total_blocks)

    # Double-buffered inputs + small accumulators + chunk-sized temporaries.
    in_block_bytes = block_rows * bytes_per_row
    vmem_limit = int(min(48 * 1024 * 1024,
                         max(32 * 1024 * 1024, 2 * in_block_bytes + 4 * 1024 * 1024)))

    partials = pl.pallas_call(
        kernel,
        out_shape=jax.ShapeDtypeStruct((num_cores, 3, 8, LANES), jnp.float32),
        grid_spec=pltpu.PrefetchScalarGridSpec(
            num_scalar_prefetch=0,
            grid=grid,
            in_specs=[
                pl.BlockSpec((block_rows, LANES), in_map),
                pl.BlockSpec((block_rows, LANES), in_map),
            ],
            out_specs=pl.BlockSpec((1, 3, 8, LANES), lambda c, i: (c, 0, 0, 0)),
        ),
        compiler_params=pltpu.CompilerParams(
            dimension_semantics=("parallel", "arbitrary"),
            vmem_limit_bytes=vmem_limit,
        ),
    )(x2, t2)

    sums = jnp.sum(partials, axis=(0, 2, 3))   # [intersection, sum_p, sum_t]
    intersection, p_sum, t_sum = sums[0], sums[1], sums[2]
    dice = (2.0 * intersection + smooth) / (p_sum + t_sum + smooth)
    return 1.0 - dice


def _dice_loss_ref(inputs, targets, smooth=1.0):
    p = jnp.clip(jax.nn.sigmoid(inputs.reshape(-1).astype(jnp.float32)), 0.0, 1.0)
    t = targets.reshape(-1).astype(jnp.float32)
    inter = jnp.sum(p * t)
    dice = (2.0 * inter + smooth) / (jnp.sum(p) + jnp.sum(t) + smooth)
    return 1.0 - dice


if __name__ == "__main__":
    key = jax.random.PRNGKey(0)
    k1, k2 = jax.random.split(key)

    # Covers: single-block fast path, a lane-partial tail (n % 128 != 0) hitting
    # the masked chunk, narrow native dtypes (no host upcast), and a multi-block
    # case whose second block is row-partial (exercises the chunked loop +
    # static tail-chunk masking + overhang skip).
    tests = [
        ((2, 4, 16, 16), jnp.float32, jnp.float32),
        ((2, 4, 32, 32), jnp.float32, jnp.float32),
        ((2, 4, 10, 12), jnp.float32, jnp.float32),
        ((2, 4, 16, 16), jnp.bfloat16, jnp.bfloat16),
        ((4, 4, 260, 256), jnp.float32, jnp.float32),
    ]
    for shape, x_dt, t_dt in tests:
        x = jax.random.normal(k1, shape, dtype=jnp.float32).astype(x_dt)
        tgt = (jax.random.uniform(k2, shape) > 0.5).astype(t_dt)

        out = jax.block_until_ready(dice_loss(x, tgt))
        ref = jax.block_until_ready(_dice_loss_ref(x, tgt))
        assert jnp.allclose(out, ref, atol=5e-5, rtol=5e-5), (shape, out, ref)

    print("KERNEL_OK")
</pallas_src>

<mosaic_0001>
module attributes {stable_mosaic.version = 11 : i64} {
  func.func @kernel(%arg0: i32, %arg1: i32, %arg2: memref<16x128xf32, #tpu.memory_space<vmem>>, %arg3: memref<16x128xf32, #tpu.memory_space<vmem>>, %arg4: memref<1x3x8x128xf32, #tpu.memory_space<vmem>>) attributes {dimension_semantics = [#tpu.dimension_semantics<parallel>, #tpu.dimension_semantics<arbitrary>], iteration_bounds = array<i64: 1, 1>, scalar_prefetch = 0 : i64, scratch_operands = 0 : i64, tpu.core_type = #tpu.core_type<tc>, window_params = [{transform_indices = @transform_0, window_bounds = array<i64: 16, 128>}, {transform_indices = @transform_1, window_bounds = array<i64: 16, 128>}, {transform_indices = @transform_2, window_bounds = array<i64: 1, 3, 8, 128>}]} {
    %c1_i32 = arith.constant 1 : i32
    %0 = arith.muli %arg0, %c1_i32 : i32
    %1 = arith.addi %0, %arg1 : i32
    %c0_i32 = arith.constant 0 : i32
    %2 = arith.cmpi eq, %arg1, %c0_i32 : i32
    %3 = arith.extui %2 : i1 to i32
    %c0_i32_0 = arith.constant 0 : i32
    %4 = arith.cmpi ne, %3, %c0_i32_0 : i32
    scf.if %4 {
      %cst_6 = arith.constant 0.000000e+00 : f32
      %17 = vector.broadcast %cst_6 : f32 to vector<1x3x8x128xf32>
      %c0 = arith.constant 0 : index
      %c0_7 = arith.constant 0 : index
      %c0_8 = arith.constant 0 : index
      %c0_9 = arith.constant 0 : index
      %18 = vector.load %arg4[%c0, %c0_7, %c0_8, %c0_9] : memref<1x3x8x128xf32, #tpu.memory_space<vmem>>, vector<1x3x8x128xf32>
      tpu.vector_store %arg4[%c0, %c0_7, %c0_8, %c0_9], %17 {strides = array<i32>} : memref<1x3x8x128xf32, #tpu.memory_space<vmem>>, vector<1x3x8x128xf32>,
    } else {
    }
    %cst = arith.constant 0.000000e+00 : f32
    %5 = vector.broadcast %cst : f32 to vector<8x128xf32>
    %c1_i32_1 = arith.constant 1 : i32
    %6 = arith.cmpi slt, %1, %c1_i32_1 : i32
    %c1_i32_2 = arith.constant 1 : i32
    %7 = arith.addi %1, %c1_i32_2 : i32
    %c16_i32 = arith.constant 16 : i32
    %8 = arith.muli %7, %c16_i32 : i32
    %c16_i32_3 = arith.constant 16 : i32
    %9 = arith.cmpi sle, %8, %c16_i32_3 : i32
    %10 = arith.andi %6, %9 : i1
    %11 = arith.extui %10 : i1 to i32
    %c0_i32_4 = arith.constant 0 : i32
    %12 = arith.cmpi ne, %11, %c0_i32_4 : i32
    scf.if %12 {
      %c0_i32_6 = arith.constant 0 : i32
      %c16_i32_7 = arith.constant 16 : i32
      %17 = arith.muli %c0_i32_6, %c16_i32_7 : i32
      %18 = tpu.assume_multiple %17, 16 : i32
      %19 = arith.index_cast %18 : i32 to index
      %c0 = arith.constant 0 : index
      %20 = vector.load %arg2[%19, %c0] : memref<16x128xf32, #tpu.memory_space<vmem>>, vector<16x128xf32>
      %21 = arith.index_cast %18 : i32 to index
      %c0_8 = arith.constant 0 : index
      %22 = vector.load %arg3[%21, %c0_8] : memref<16x128xf32, #tpu.memory_space<vmem>>, vector<16x128xf32>
      %cst_9 = arith.constant 5.000000e-01 : f32
      %23 = vector.broadcast %cst_9 : f32 to vector<16x128xf32>
      %24 = arith.mulf %23, %20 : vector<16x128xf32>
      %25 = math.tanh %24 : vector<16x128xf32>
      %cst_10 = arith.constant 5.000000e-01 : f32
      %26 = vector.broadcast %cst_10 : f32 to vector<16x128xf32>
      %27 = arith.mulf %26, %25 : vector<16x128xf32>
      %cst_11 = arith.constant 5.000000e-01 : f32
      %28 = vector.broadcast %cst_11 : f32 to vector<16x128xf32>
      %29 = arith.addf %27, %28 : vector<16x128xf32>
      %30 = arith.mulf %29, %22 : vector<16x128xf32>
      %31 = vector.shape_cast %30 : vector<16x128xf32> to vector<2x8x128xf32>
      %cst_12 = arith.constant dense<0.000000e+00> : vector<8x128xf32>
      %32 = vector.multi_reduction <add>, %31, %cst_12 [0] : vector<2x8x128xf32> to vector<8x128xf32>
      %33 = vector.shape_cast %29 : vector<16x128xf32> to vector<2x8x128xf32>
      %cst_13 = arith.constant dense<0.000000e+00> : vector<8x128xf32>
      %34 = vector.multi_reduction <add>, %33, %cst_13 [0] : vector<2x8x128xf32> to vector<8x128xf32>
      %35 = vector.shape_cast %22 : vector<16x128xf32> to vector<2x8x128xf32>
      %cst_14 = arith.constant dense<0.000000e+00> : vector<8x128xf32>
      %36 = vector.multi_reduction <add>, %35, %cst_14 [0] : vector<2x8x128xf32> to vector<8x128xf32>
      %37 = arith.addf %5, %32 : vector<8x128xf32>
      %38 = arith.addf %5, %34 : vector<8x128xf32>
      %39 = arith.addf %5, %36 : vector<8x128xf32>
      %c1_i32_15 = arith.constant 1 : i32
      %c0_16 = arith.constant 0 : index
      %c0_17 = arith.constant 0 : index
      %c0_18 = arith.constant 0 : index
      %c0_19 = arith.constant 0 : index
      %40 = vector.load %arg4[%c0_16, %c0_17, %c0_18, %c0_19] : memref<1x3x8x128xf32, #tpu.memory_space<vmem>>, vector<1x1x8x128xf32>
      %41 = vector.shape_cast %40 : vector<1x1x8x128xf32> to vector<8x128xf32>
      %42 = arith.addf %41, %37 : vector<8x128xf32>
      %c0_20 = arith.constant 0 : index
      %c0_21 = arith.constant 0 : index
      %c0_22 = arith.constant 0 : index
      %c0_23 = arith.constant 0 : index
      %43 = vector.load %arg4[%c0_20, %c0_21, %c0_22, %c0_23] : memref<1x3x8x128xf32, #tpu.memory_space<vmem>>, vector<1x1x8x128xf32>
      %44 = vector.shape_cast %43 : vector<1x1x8x128xf32> to vector<8x128xf32>
      %45 = vector.shape_cast %42 : vector<8x128xf32> to vector<1x1x8x128xf32>
      tpu.vector_store %arg4[%c0_20, %c0_21, %c0_22, %c0_23], %45 {strides = array<i32>} : memref<1x3x8x128xf32, #tpu.memory_space<vmem>>, vector<1x1x8x128xf32>,
      %c0_24 = arith.constant 0 : index
      %c1 = arith.constant 1 : index
      %c0_25 = arith.constant 0 : index
      %c0_26 = arith.constant 0 : index
      %46 = vector.load %arg4[%c0_24, %c1, %c0_25, %c0_26] : memref<1x3x8x128xf32, #tpu.memory_space<vmem>>, vector<1x1x8x128xf32>
      %47 = vector.shape_cast %46 : vector<1x1x8x128xf32> to vector<8x128xf32>
      %48 = arith.addf %47, %38 : vector<8x128xf32>
      %c0_27 = arith.constant 0 : index
      %c1_28 = arith.constant 1 : index
      %c0_29 = arith.constant 0 : index
      %c0_30 = arith.constant 0 : index
      %49 = vector.load %arg4[%c0_27, %c1_28, %c0_29, %c0_30] : memref<1x3x8x128xf32, #tpu.memory_space<vmem>>, vector<1x1x8x128xf32>
      %50 = vector.shape_cast %49 : vector<1x1x8x128xf32> to vector<8x128xf32>
      %51 = vector.shape_cast %48 : vector<8x128xf32> to vector<1x1x8x128xf32>
      tpu.vector_store %arg4[%c0_27, %c1_28, %c0_29, %c0_30], %51 {strides = array<i32>} : memref<1x3x8x128xf32, #tpu.memory_space<vmem>>, vector<1x1x8x128xf32>,
      %c0_31 = arith.constant 0 : index
      %c2 = arith.constant 2 : index
      %c0_32 = arith.constant 0 : index
      %c0_33 = arith.constant 0 : index
      %52 = vector.load %arg4[%c0_31, %c2, %c0_32, %c0_33] : memref<1x3x8x128xf32, #tpu.memory_space<vmem>>, vector<1x1x8x128xf32>
      %53 = vector.shape_cast %52 : vector<1x1x8x128xf32> to vector<8x128xf32>
      %54 = arith.addf %53, %39 : vector<8x128xf32>
      %c0_34 = arith.constant 0 : index
      %c2_35 = arith.constant 2 : index
      %c0_36 = arith.constant 0 : index
      %c0_37 = arith.constant 0 : index
      %55 = vector.load %arg4[%c0_34, %c2_35, %c0_36, %c0_37] : memref<1x3x8x128xf32, #tpu.memory_space<vmem>>, vector<1x1x8x128xf32>
      %56 = vector.shape_cast %55 : vector<1x1x8x128xf32> to vector<8x128xf32>
      %57 = vector.shape_cast %54 : vector<8x128xf32> to vector<1x1x8x128xf32>
      tpu.vector_store %arg4[%c0_34, %c2_35, %c0_36, %c0_37], %57 {strides = array<i32>} : memref<1x3x8x128xf32, #tpu.memory_space<vmem>>, vector<1x1x8x128xf32>,
    } else {
    }
    %true = arith.constant true
    %13 = arith.xori %9, %true : i1
    %14 = arith.andi %6, %13 : i1
    %15 = arith.extui %14 : i1 to i32
    %c0_i32_5 = arith.constant 0 : i32
    %16 = arith.cmpi ne, %15, %c0_i32_5 : i32
    scf.if %16 {
      %c0_i32_6 = arith.constant 0 : i32
      %c16_i32_7 = arith.constant 16 : i32
      %17 = arith.muli %c0_i32_6, %c16_i32_7 : i32
      %18 = tpu.assume_multiple %17, 16 : i32
      %19 = arith.index_cast %18 : i32 to index
      %c0 = arith.constant 0 : index
      %20 = vector.load %arg2[%19, %c0] : memref<16x128xf32, #tpu.memory_space<vmem>>, vector<16x128xf32>
      %21 = arith.index_cast %18 : i32 to index
      %c0_8 = arith.constant 0 : index
      %22 = vector.load %arg3[%21, %c0_8] : memref<16x128xf32, #tpu.memory_space<vmem>>, vector<16x128xf32>
      %cst_9 = arith.constant 5.000000e-01 : f32
      %23 = vector.broadcast %cst_9 : f32 to vector<16x128xf32>
      %24 = arith.mulf %23, %20 : vector<16x128xf32>
      %25 = math.tanh %24 : vector<16x128xf32>
      %cst_10 = arith.constant 5.000000e-01 : f32
      %26 = vector.broadcast %cst_10 : f32 to vector<16x128xf32>
      %27 = arith.mulf %26, %25 : vector<16x128xf32>
      %cst_11 = arith.constant 5.000000e-01 : f32
      %28 = vector.broadcast %cst_11 : f32 to vector<16x128xf32>
      %29 = arith.addf %27, %28 : vector<16x128xf32>
      %30 = arith.mulf %29, %22 : vector<16x128xf32>
      %31 = vector.shape_cast %30 : vector<16x128xf32> to vector<2x8x128xf32>
      %cst_12 = arith.constant dense<0.000000e+00> : vector<8x128xf32>
      %32 = vector.multi_reduction <add>, %31, %cst_12 [0] : vector<2x8x128xf32> to vector<8x128xf32>
      %33 = vector.shape_cast %29 : vector<16x128xf32> to vector<2x8x128xf32>
      %cst_13 = arith.constant dense<0.000000e+00> : vector<8x128xf32>
      %34 = vector.multi_reduction <add>, %33, %cst_13 [0] : vector<2x8x128xf32> to vector<8x128xf32>
      %35 = vector.shape_cast %22 : vector<16x128xf32> to vector<2x8x128xf32>
      %cst_14 = arith.constant dense<0.000000e+00> : vector<8x128xf32>
      %36 = vector.multi_reduction <add>, %35, %cst_14 [0] : vector<2x8x128xf32> to vector<8x128xf32>
      %37 = arith.addf %5, %32 : vector<8x128xf32>
      %38 = arith.addf %5, %34 : vector<8x128xf32>
      %39 = arith.addf %5, %36 : vector<8x128xf32>
      %c1_i32_15 = arith.constant 1 : i32
      %c0_16 = arith.constant 0 : index
      %c0_17 = arith.constant 0 : index
      %c0_18 = arith.constant 0 : index
      %c0_19 = arith.constant 0 : index
      %40 = vector.load %arg4[%c0_16, %c0_17, %c0_18, %c0_19] : memref<1x3x8x128xf32, #tpu.memory_space<vmem>>, vector<1x1x8x128xf32>
      %41 = vector.shape_cast %40 : vector<1x1x8x128xf32> to vector<8x128xf32>
      %42 = arith.addf %41, %37 : vector<8x128xf32>
      %c0_20 = arith.constant 0 : index
      %c0_21 = arith.constant 0 : index
      %c0_22 = arith.constant 0 : index
      %c0_23 = arith.constant 0 : index
      %43 = vector.load %arg4[%c0_20, %c0_21, %c0_22, %c0_23] : memref<1x3x8x128xf32, #tpu.memory_space<vmem>>, vector<1x1x8x128xf32>
      %44 = vector.shape_cast %43 : vector<1x1x8x128xf32> to vector<8x128xf32>
      %45 = vector.shape_cast %42 : vector<8x128xf32> to vector<1x1x8x128xf32>
      tpu.vector_store %arg4[%c0_20, %c0_21, %c0_22, %c0_23], %45 {strides = array<i32>} : memref<1x3x8x128xf32, #tpu.memory_space<vmem>>, vector<1x1x8x128xf32>,
      %c0_24 = arith.constant 0 : index
      %c1 = arith.constant 1 : index
      %c0_25 = arith.constant 0 : index
      %c0_26 = arith.constant 0 : index
      %46 = vector.load %arg4[%c0_24, %c1, %c0_25, %c0_26] : memref<1x3x8x128xf32, #tpu.memory_space<vmem>>, vector<1x1x8x128xf32>
      %47 = vector.shape_cast %46 : vector<1x1x8x128xf32> to vector<8x128xf32>
      %48 = arith.addf %47, %38 : vector<8x128xf32>
      %c0_27 = arith.constant 0 : index
      %c1_28 = arith.constant 1 : index
      %c0_29 = arith.constant 0 : index
      %c0_30 = arith.constant 0 : index
      %49 = vector.load %arg4[%c0_27, %c1_28, %c0_29, %c0_30] : memref<1x3x8x128xf32, #tpu.memory_space<vmem>>, vector<1x1x8x128xf32>
      %50 = vector.shape_cast %49 : vector<1x1x8x128xf32> to vector<8x128xf32>
      %51 = vector.shape_cast %48 : vector<8x128xf32> to vector<1x1x8x128xf32>
      tpu.vector_store %arg4[%c0_27, %c1_28, %c0_29, %c0_30], %51 {strides = array<i32>} : memref<1x3x8x128xf32, #tpu.memory_space<vmem>>, vector<1x1x8x128xf32>,
      %c0_31 = arith.constant 0 : index
      %c2 = arith.constant 2 : index
      %c0_32 = arith.constant 0 : index
      %c0_33 = arith.constant 0 : index
      %52 = vector.load %arg4[%c0_31, %c2, %c0_32, %c0_33] : memref<1x3x8x128xf32, #tpu.memory_space<vmem>>, vector<1x1x8x128xf32>
      %53 = vector.shape_cast %52 : vector<1x1x8x128xf32> to vector<8x128xf32>
      %54 = arith.addf %53, %39 : vector<8x128xf32>
      %c0_34 = arith.constant 0 : index
      %c2_35 = arith.constant 2 : index
      %c0_36 = arith.constant 0 : index
      %c0_37 = arith.constant 0 : index
      %55 = vector.load %arg4[%c0_34, %c2_35, %c0_36, %c0_37] : memref<1x3x8x128xf32, #tpu.memory_space<vmem>>, vector<1x1x8x128xf32>
      %56 = vector.shape_cast %55 : vector<1x1x8x128xf32> to vector<8x128xf32>
      %57 = vector.shape_cast %54 : vector<8x128xf32> to vector<1x1x8x128xf32>
      tpu.vector_store %arg4[%c0_34, %c2_35, %c0_36, %c0_37], %57 {strides = array<i32>} : memref<1x3x8x128xf32, #tpu.memory_space<vmem>>, vector<1x1x8x128xf32>,
    } else {
    }
    return
  }
  func.func @transform_0(%arg0: i32, %arg1: i32) -> (i32, i32) {
    %c1_i32 = arith.constant 1 : i32
    %0 = arith.muli %arg0, %c1_i32 : i32
    %1 = arith.addi %0, %arg1 : i32
    %c0_i32 = arith.constant 0 : i32
    %2 = arith.minsi %1, %c0_i32 : i32
    %c0_i32_0 = arith.constant 0 : i32
    %c0_i32_1 = arith.constant 0 : i32
    return %2, %c0_i32_0 : i32, i32
  }
  func.func @transform_1(%arg0: i32, %arg1: i32) -> (i32, i32) {
    %c1_i32 = arith.constant 1 : i32
    %0 = arith.muli %arg0, %c1_i32 : i32
    %1 = arith.addi %0, %arg1 : i32
    %c0_i32 = arith.constant 0 : i32
    %2 = arith.minsi %1, %c0_i32 : i32
    %c0_i32_0 = arith.constant 0 : i32
    %c0_i32_1 = arith.constant 0 : i32
    return %2, %c0_i32_0 : i32, i32
  }
  func.func @transform_2(%arg0: i32, %arg1: i32) -> (i32, i32, i32, i32) {
    %c0_i32 = arith.constant 0 : i32
    %c0_i32_0 = arith.constant 0 : i32
    %c0_i32_1 = arith.constant 0 : i32
    %c0_i32_2 = arith.constant 0 : i32
    return %arg0, %c0_i32, %c0_i32_0, %c0_i32_1 : i32, i32, i32, i32
  }
}

</mosaic_0001>

<bundles_post_ra>
// kernel: tpu_custom_call.1
= control target key start
LH: loop header
LB: loop body
LE: loop exit
PB: predicated region body
PF: predicated region fallthrough
CT: control target
= control target key end

     0   :  { %7 = vsyncpa [#allocation3], 0  ;;  %s312_s0 = inlined_call_operand.hbm [shape: f32[16,128], index: 0, kind: input, shape index: {}]   ;;  %s313_s1 = inlined_call_operand.hbm [shape: f32[16,128], index: 1, kind: input, shape index: {}]   ;;  %s314_s2 = inlined_call_operand.hbm [shape: f32[1,3,8,128], index: 2, kind: output, shape index: {}]  }
   0x1   :  { %8 = vsyncpa [#allocation6], 0 }
   0x2   :  { %9 = vsyncpa [#allocation4], 0  ;;  %s247_s9 = smov [#allocation2]   ;;  %s175_s13 = scalar_lea.hbm %s312_s0, 256 }
   0x3   :  { %s21_s10 = sshll.u32 %s247_s9, 4  ;;  %p176_p0 = scmp.ne.s32.totalorder %s312_s0, %s175_s13  ;;  %s22_s10 = int_to_ptr.vmem [resolvable:$true] %s21_s10 }
   0x4   :  { %p179_p1 = scmp.lt.u32.totalorder %s175_s13, %s312_s0 }
   0x6   :  { %p181_p2 = pnand %p179_p1, %p176_p0 }
   0x8   :  { %184 = shalt.err (!%p181_p2)
}
   0x9   :  { %s185_s18 = scalar_lea.vmem %s22_s10, 256  ;;  %p190_p4 = scmp.lt.s32.totalorder %s22_s10, %s22_s10 }
   0xa   :  { %p186_p3 = scmp.ne.s32.totalorder %s22_s10, %s185_s18  ;;  %p191_p5 = scmp.lt.s32.totalorder %s185_s18, %s185_s18 }
   0xc   :  { %p192_p6 = por %p191_p5, %p190_p4 }
   0xe   :  { %p193_p7 = pnand %p192_p6, %p186_p3 }
  0x10   :  { %196 = shalt.err (!%p193_p7)
}
  0x11   :  { %s248_s19 = smov 128   ;;  %s249_s20 = smov 8  }
  0x12   :  { %27 = dma.hbm_to_vmem [thread:$0]  %s312_s0, 256, %s22_s10, [#allocation3], %s248_s19, %s248_s19, %s249_s20  }
  0x13   :  { %s250_s23 = smov [#allocation5]   ;;  %s197_s27 = scalar_lea.hbm %s313_s1, 256 }
  0x14   :  { %s39_s24 = sshll.u32 %s250_s23, 4  ;;  %p198_p8 = scmp.ne.s32.totalorder %s313_s1, %s197_s27  ;;  %s40_s24 = int_to_ptr.vmem [resolvable:$true] %s39_s24 }
  0x15   :  { %p201_p9 = scmp.lt.u32.totalorder %s197_s27, %s313_s1 }
  0x17   :  { %p203_p10 = pnand %p201_p9, %p198_p8 }
  0x19   :  { %206 = shalt.err (!%p203_p10)
}
  0x1a   :  { %s207_s4 = scalar_lea.vmem %s40_s24, 256  ;;  %p212_p12 = scmp.lt.s32.totalorder %s40_s24, %s40_s24 }
  0x1b   :  { %p208_p11 = scmp.ne.s32.totalorder %s40_s24, %s207_s4  ;;  %p213_p13 = scmp.lt.s32.totalorder %s207_s4, %s207_s4 }
  0x1d   :  { %p214_p0 = por %p213_p13, %p212_p12 }
  0x1f   :  { %p215_p1 = pnand %p214_p0, %p208_p11 }
  0x21   :  { %218 = shalt.err (!%p215_p1)
}
  0x22   :  { %45 = dma.hbm_to_vmem [thread:$0]  %s313_s1, 256, %s40_s24, [#allocation6], %s248_s19, %s248_s19, %s249_s20  }
  0x23   :  { %241 = dma.done.wait [#allocation3], 256  }
  0x24   :  { %242 = vsyncadd [#allocation3], 4294967040 }
  0x25   :  { %243 = dma.done.wait [#allocation6], 256  }
  0x26   :  { %244 = vsyncadd [#allocation6], 4294967040  ;;  %v76_v0 = vld [vmem:[#allocation2] sm:$0xff]  ;;  %v77_v1 = vld [vmem:[#allocation2 + $0x8] sm:$0xff]  ;;  %s251_s1 = smov [#allocation7]  }
  0x27   :  { %v78_v2 = vld [vmem:[#allocation5] sm:$0xff]  ;;  %v79_v3 = vld [vmem:[#allocation5 + $0x8] sm:$0xff]  ;;  %v80_v4 = vmul.f32 0.5, %v76_v0  ;;  %v81_v5 = vmul.f32 0.5, %v77_v1  ;;  %s148_s6 = sshll.u32 %s251_s1, 4  ;;  %s149_s6 = int_to_ptr.vmem [resolvable:$true] %s148_s6 }
  0x28   :  { %v92_v6 = vadd.f32 %v79_v3, %v78_v2  ;;  %s219_s7 = scalar_lea.vmem %s149_s6, 384  ;;  %p224_p3 = scmp.lt.s32.totalorder %s149_s6, %s149_s6 }
  0x29   :  { %171 = vtanh.f32 %v80_v4  ;;  %p220_p2 = scmp.ne.s32.totalorder %s149_s6, %s219_s7  ;;  %p225_p4 = scmp.lt.s32.totalorder %s219_s7, %s219_s7 }
  0x2a   :  { %173 = vtanh.f32 %v81_v5  ;;  %106 = vst [vmem:[#allocation7 + $0x10] sm:$0xff] %v92_v6 }
  0x2b   :  { %p226_p5 = por %p225_p4, %p224_p3 }
  0x2d   :  { %p227_p6 = pnand %p226_p5, %p220_p2 }
  0x33   :  { %v172_v7 = vpop.eup %171 }
  0x34   :  { %v174_v8 = vpop.eup %173  ;;  %v84_v9 = vmul.f32 0.5, %v172_v7 }
  0x35   :  { %v85_v10 = vmul.f32 0.5, %v174_v8 }
  0x36   :  { %v86_v11 = vadd.f32 0.5, %v84_v9 }
  0x37   :  { %v87_v12 = vadd.f32 0.5, %v85_v10 }
  0x38   :  { %v88_v13 = vmul.f32 %v86_v11, %v78_v2 }
  0x39   :  { %v89_v14 = vmul.f32 %v87_v12, %v79_v3  ;;  %v91_v15 = vadd.f32 %v87_v12, %v86_v11 }
  0x3b   :  { %v90_v16 = vadd.f32 %v89_v14, %v88_v13  ;;  %102 = vst [vmem:[#allocation7 + $0x8] sm:$0xff] %v91_v15 }
  0x3d   :  { %98 = vst [vmem:[#allocation7] sm:$0xff] %v90_v16 }
  0x3e   :  { %230 = shalt.err (!%p227_p6)
}
  0x3f   :  { %s231_s10 = scalar_lea.hbm %s314_s2, 384 }
  0x40   :  { %p232_p7 = scmp.ne.s32.totalorder %s314_s2, %s231_s10  ;;  %p235_p8 = scmp.lt.u32.totalorder %s231_s10, %s314_s2 }
  0x42   :  { %p237_p9 = pnand %p235_p8, %p232_p7 }
  0x44   :  { %240 = shalt.err (!%p237_p9)
}
  0x45   :  { %154 = dma.vmem_to_hbm [thread:$0]  %s149_s6, 384, %s314_s2, [#allocation4], %s248_s19, %s248_s19, %s249_s20  }
  0x46   :  { %245 = dma.done.wait [#allocation4], 384  }
  0x47   :  { %246 = vsyncadd [#allocation4], 4294966912 }
  0x48   :  { %158 = vsyncpa [#allocation3], 1 }
  0x49   :  { %159 = vsyncpa [#allocation6], 1 }
  0x4a   :  { %160 = vsyncpa [#allocation4], 1 }

</bundles_post_ra>
